<compile_context>
chip_gen: v7x
topology: tpu7x:2x2x1
jax: 0.10.0
libtpu: 0.0.40
codegen_flags: <defaults>
</compile_context>

<pallas_src>
import functools

import jax
import jax.numpy as jnp
import numpy as np
from jax.experimental import pallas as pl
from jax.experimental.pallas import tpu as pltpu


# ---------------- fused Pallas kernel ----------------

def _make_upscale_kernel(pad_left: int, n_up: int, seq_len: int):
    """One grid step = `bc` batch elements folded into the lane axis."""

    def kernel(lidx_ref, x1_ref, x2_ref, scat_ref, wup_ref, bup_ref,
               w1a_ref, w1b_ref, b1_ref, w2_ref, b2_ref, o_ref):
        f32 = jnp.float32
        lidx = lidx_ref[...]                 # (1, Lf) int32: pos inside its batch elem
        x1 = x1_ref[...]                     # (C, bc*L1)  compute dtype
        x2 = x2_ref[...]                     # (C, Lf)     compute dtype
        cdt = x2.dtype
        C, Lf = x2.shape

        # ---- hoisted column masks: computed once per grid step ----
        valid = jnp.logical_and(lidx >= pad_left, lidx < pad_left + n_up)
        even = ((lidx + pad_left) & 1) == 0          # parity of (l - pad_left)
        lok = lidx > 0                               # l-1 stays in this batch elem
        rok = lidx < seq_len - 1                     # l+1 stays in this batch elem
        zed = jnp.zeros((), cdt)

        # ---- ConvTranspose1d(C, C, k=2, s=2) + F.pad, all in VMEM ----
        # wup[k*C + o, c] = W_up[c, o, k]; both taps in one matmul over L1 cols.
        ucat = jnp.dot(wup_ref[...], x1, preferred_element_type=f32)      # (2C, bc*L1)
        # Static 0/1 scatter matmul duplicates column l of each batch element
        # into output columns pad_left+2l and pad_left+2l+1 (MXU has plenty of
        # slack here; no lane gather, no HBM intermediate).
        uexp = jnp.dot(ucat, scat_ref[...], preferred_element_type=f32)   # (2C, Lf)
        tap = jnp.where(even, uexp[:C, :], uexp[C:, :])                   # stride-2 interleave
        up = jnp.where(valid, tap + bup_ref[...], 0.0).astype(cdt)        # F.pad region -> 0

        def shifts(x):
            # x[:, l-1] / x[:, l+1] via XLU rotations (positive static shifts)
            # + hoisted edge masks -- no padded copy, no 3x replication.
            xl = jnp.where(lok, pltpu.roll(x, 1, axis=1), zed)
            xr = jnp.where(rok, pltpu.roll(x, Lf - 1, axis=1), zed)
            return xl, xr

        # ---- Conv1d(2C -> out, k=3, p=1) + ReLU.  W1 is split into its
        #      x2-column and up-column blocks so cat([x2, up]) never exists. ----
        xl2, xr2 = shifts(x2)
        xlu, xru = shifts(up)
        acc = jnp.dot(w1a_ref[0], xl2, preferred_element_type=f32)
        acc += jnp.dot(w1b_ref[0], xlu, preferred_element_type=f32)
        acc += jnp.dot(w1a_ref[1], x2, preferred_element_type=f32)
        acc += jnp.dot(w1b_ref[1], up, preferred_element_type=f32)
        acc += jnp.dot(w1a_ref[2], xr2, preferred_element_type=f32)
        acc += jnp.dot(w1b_ref[2], xru, preferred_element_type=f32)
        h = jnp.maximum(acc + b1_ref[...], 0.0).astype(cdt)               # ReLU in f32

        # ---- Conv1d(out -> out, k=3, p=1) + ReLU ----
        hl, hr = shifts(h)
        acc2 = jnp.dot(w2_ref[0], hl, preferred_element_type=f32)
        acc2 += jnp.dot(w2_ref[1], h, preferred_element_type=f32)
        acc2 += jnp.dot(w2_ref[2], hr, preferred_element_type=f32)
        o_ref[...] = jnp.maximum(acc2 + b2_ref[...], 0.0).astype(o_ref.dtype)

    return kernel


# ---------------- wrapper ----------------

def upscale_forward(x1, x2, params, compute_dtype=jnp.bfloat16):
    """UpScale forward.  x1: (B, C, L1), x2: (B, C, L2), PyTorch NCL layout."""
    B, C, L1 = x1.shape
    _, _, L2 = x2.shape
    out_ch = params["b2"].shape[0]
    n_up = 2 * L1
    diff = L2 - n_up
    pad_l = diff // 2
    cdt = jnp.dtype(compute_dtype)

    # Batch elements folded per grid step.  At toy shapes this is the whole
    # batch (one step, full-batch lane fold); for larger B only chunk when the
    # folded lane widths stay (8,128)-legal.
    bc = next((c for c in range(1, B) if B % c == 0
               and (c * L2) % 128 == 0 and (c * L1) % 128 == 0), B)
    n_chunks = B // bc
    lane_f = bc * L2

    # ---- only RAW activations touch HBM: fold batch into the lane axis and
    #      ship in compute_dtype (bf16) -- pure layout plumbing, half the bytes.
    x1f = jnp.transpose(x1, (1, 0, 2)).reshape(C, B * L1).astype(cdt)
    x2f = jnp.transpose(x2, (1, 0, 2)).reshape(C, B * L2).astype(cdt)

    # Per-chunk column index: position of each lane inside its batch element.
    lidx = jnp.tile(jnp.arange(L2, dtype=jnp.int32), bc).reshape(1, lane_f)

    # Static 0/1 scatter matrix realising "repeat(x1, 2) + F.pad" on the MXU.
    scat_np = np.zeros((bc * L1, lane_f), np.float32)
    for b in range(bc):
        for l in range(L1):
            for k in range(2):
                p = pad_l + 2 * l + k
                if 0 <= p < L2:
                    scat_np[b * L1 + l, b * L2 + p] = 1.0
    scat = jnp.asarray(scat_np)

    # ---- PyTorch weight layouts -> matmul layouts ----
    # ConvTranspose1d weight (C, C, 2) -> (2C, C): row = k*C + o, col = c.
    wup = jnp.transpose(params["w_up"], (2, 1, 0)).reshape(2 * C, C).astype(cdt)
    bup = params["b_up"].reshape(C, 1).astype(jnp.float32)
    # Conv1 weight (out, 2C, 3) split into x2-/up-column blocks: (3, out, C).
    w1a = jnp.transpose(params["w1"][:, :C, :], (2, 0, 1)).astype(cdt)
    w1b = jnp.transpose(params["w1"][:, C:, :], (2, 0, 1)).astype(cdt)
    b1 = params["b1"].reshape(out_ch, 1).astype(jnp.float32)
    # Conv2 weight (out, out, 3) -> (3, out, out).
    w2 = jnp.transpose(params["w2"], (2, 0, 1)).astype(cdt)
    b2 = params["b2"].reshape(out_ch, 1).astype(jnp.float32)

    itm = jnp.dtype(cdt).itemsize
    flops = 2 * B * (2 * C * C * L1                 # conv-transpose taps
                     + 2 * C * L1 * lane_f          # interleave/pad scatter matmul
                     + out_ch * 2 * C * 3 * L2      # conv1 (k=3, in=2C)
                     + out_ch * out_ch * 3 * L2)    # conv2 (k=3)
    bytes_accessed = int((x1f.size + x2f.size
                          + wup.size + w1a.size + w1b.size + w2.size) * itm
                         + (bup.size + b1.size + b2.size
                            + scat.size + lidx.size) * 4
                         + B * out_ch * L2 * 4)

    kernel = _make_upscale_kernel(pad_l, n_up, L2)

    y = pl.pallas_call(
        kernel,
        out_shape=jax.ShapeDtypeStruct((out_ch, B * L2), jnp.float32),
        grid=(n_chunks,),
        in_specs=[
            pl.BlockSpec((1, lane_f), lambda g: (0, 0)),             # lidx
            pl.BlockSpec((C, bc * L1), lambda g: (0, g)),            # x1 (folded, raw)
            pl.BlockSpec((C, lane_f), lambda g: (0, g)),             # x2 (folded, raw)
            pl.BlockSpec((bc * L1, lane_f), lambda g: (0, 0)),       # scatter matrix
            pl.BlockSpec((2 * C, C), lambda g: (0, 0)),              # W_up (both taps)
            pl.BlockSpec((C, 1), lambda g: (0, 0)),                  # b_up
            pl.BlockSpec((3, out_ch, C), lambda g: (0, 0, 0)),       # W1 (x2 cols)
            pl.BlockSpec((3, out_ch, C), lambda g: (0, 0, 0)),       # W1 (up cols)
            pl.BlockSpec((out_ch, 1), lambda g: (0, 0)),             # b1
            pl.BlockSpec((3, out_ch, out_ch), lambda g: (0, 0, 0)),  # W2
            pl.BlockSpec((out_ch, 1), lambda g: (0, 0)),             # b2
        ],
        out_specs=pl.BlockSpec((out_ch, lane_f), lambda g: (0, g)),
        compiler_params=pltpu.CompilerParams(
            dimension_semantics=("parallel",)),
        cost_estimate=pl.CostEstimate(flops=flops, transcendentals=0,
                                      bytes_accessed=bytes_accessed),
    )(lidx, x1f, x2f, scat, wup, bup, w1a, w1b, b1, w2, b2)

    # (out_ch, B*L2) -> (B, out_ch, L2): layout plumbing on the output slab.
    return jnp.transpose(y.reshape(out_ch, B, L2), (1, 0, 2))


# ---------------- pure-JAX reference (correctness check) ----------------

def ref_forward(x1, x2, p):
    B, C, L1 = x1.shape
    L2 = x2.shape[2]
    # ConvTranspose1d(k=2, s=2): up[b, o, 2l+k] = sum_c x1[b,c,l] W[c,o,k] + b[o]
    up = jnp.einsum('bcl,cok->bolk', x1, p["w_up"]).reshape(B, C, 2 * L1)
    up = up + p["b_up"][None, :, None]
    diff = L2 - 2 * L1
    up = jnp.pad(up, ((0, 0), (0, 0), (diff // 2, diff - diff // 2)))
    xc = jnp.concatenate([x2, up], axis=1)

    def conv3_ncl(x, w, b):
        L = x.shape[2]
        xp = jnp.pad(x, ((0, 0), (0, 0), (1, 1)))
        out = sum(jnp.einsum('bcl,oc->bol', xp[:, :, k:k + L], w[:, :, k])
                  for k in range(3))
        return out + b[None, :, None]

    h = jax.nn.relu(conv3_ncl(xc, p["w1"], p["b1"]))
    return jax.nn.relu(conv3_ncl(h, p["w2"], p["b2"]))


# ---------------- main ----------------

if __name__ == "__main__":
    key = jax.random.PRNGKey(0)
    B, in_ch, out_ch = 2, 16, 16
    C = in_ch // 2            # channels of x1 / x2
    L1, L2 = 7, 16            # 2*L1 = 14 -> F.pad(1, 1) to match L2 = 16

    ks = jax.random.split(key, 8)
    x1 = jax.random.normal(ks[0], (B, C, L1), jnp.float32)
    x2 = jax.random.normal(ks[1], (B, C, L2), jnp.float32)

    # deterministic synthetic parameters (PyTorch weight layouts)
    params = {
        "w_up": 0.2 * jax.random.normal(ks[2], (C, C, 2), jnp.float32),         # ConvTranspose1d
        "b_up": 0.1 * jax.random.normal(ks[3], (C,), jnp.float32),
        "w1": 0.2 * jax.random.normal(ks[4], (out_ch, in_ch, 3), jnp.float32),   # Conv1d #1
        "b1": 0.1 * jax.random.normal(ks[5], (out_ch,), jnp.float32),
        "w2": 0.2 * jax.random.normal(ks[6], (out_ch, out_ch, 3), jnp.float32),  # Conv1d #2
        "b2": 0.1 * jax.random.normal(ks[7], (out_ch,), jnp.float32),
    }

    ref = jax.block_until_ready(ref_forward(x1, x2, params))

    # f32 everywhere: tight check against the pure-JAX reference.
    fwd_f32 = jax.jit(functools.partial(upscale_forward, params=params,
                                        compute_dtype=jnp.float32))
    out_f32 = jax.block_until_ready(fwd_f32(x1, x2))
    assert out_f32.shape == (B, out_ch, L2)
    np.testing.assert_allclose(np.asarray(out_f32), np.asarray(ref),
                               rtol=1e-4, atol=1e-4)

    # bf16 activation + weight operands (default fast path on all chips), f32
    # accumulation: looser tolerance is the expected bf16 input rounding.
    fwd_bf16 = jax.jit(functools.partial(upscale_forward, params=params,
                                         compute_dtype=jnp.bfloat16))
    out_bf16 = jax.block_until_ready(fwd_bf16(x1, x2))
    assert out_bf16.shape == (B, out_ch, L2)
    np.testing.assert_allclose(np.asarray(out_bf16), np.asarray(ref),
                               rtol=1e-1, atol=1e-1)

    print("KERNEL_OK")
</pallas_src>

<mosaic_0001>
module attributes {stable_mosaic.version = 11 : i64} {
  func.func @kernel(%arg0: i32, %arg1: memref<1x32xi32, #tpu.memory_space<vmem>>, %arg2: memref<8x14xf32, #tpu.memory_space<vmem>>, %arg3: memref<8x32xf32, #tpu.memory_space<vmem>>, %arg4: memref<14x32xf32, #tpu.memory_space<vmem>>, %arg5: memref<16x8xf32, #tpu.memory_space<vmem>>, %arg6: memref<8x1xf32, #tpu.memory_space<vmem>>, %arg7: memref<3x16x8xf32, #tpu.memory_space<vmem>>, %arg8: memref<3x16x8xf32, #tpu.memory_space<vmem>>, %arg9: memref<16x1xf32, #tpu.memory_space<vmem>>, %arg10: memref<3x16x16xf32, #tpu.memory_space<vmem>>, %arg11: memref<16x1xf32, #tpu.memory_space<vmem>>, %arg12: memref<16x32xf32, #tpu.memory_space<vmem>>) attributes {dimension_semantics = [#tpu.dimension_semantics<parallel>], iteration_bounds = array<i64: 1>, scalar_prefetch = 0 : i64, scratch_operands = 0 : i64, tpu.core_type = #tpu.core_type<tc>, window_params = [{pipeline_mode = #tpu.pipeline_mode<synchronous>, transform_indices = @transform_0, window_bounds = array<i64: 1, 32>}, {transform_indices = @transform_1, window_bounds = array<i64: 8, 14>}, {transform_indices = @transform_2, window_bounds = array<i64: 8, 32>}, {pipeline_mode = #tpu.pipeline_mode<synchronous>, transform_indices = @transform_3, window_bounds = array<i64: 14, 32>}, {pipeline_mode = #tpu.pipeline_mode<synchronous>, transform_indices = @transform_4, window_bounds = array<i64: 16, 8>}, {pipeline_mode = #tpu.pipeline_mode<synchronous>, transform_indices = @transform_5, window_bounds = array<i64: 8, 1>}, {pipeline_mode = #tpu.pipeline_mode<synchronous>, transform_indices = @transform_6, window_bounds = array<i64: 3, 16, 8>}, {pipeline_mode = #tpu.pipeline_mode<synchronous>, transform_indices = @transform_7, window_bounds = array<i64: 3, 16, 8>}, {pipeline_mode = #tpu.pipeline_mode<synchronous>, transform_indices = @transform_8, window_bounds = array<i64: 16, 1>}, {pipeline_mode = #tpu.pipeline_mode<synchronous>, transform_indices = @transform_9, window_bounds = array<i64: 3, 16, 16>}, {pipeline_mode = #tpu.pipeline_mode<synchronous>, transform_indices = @transform_10, window_bounds = array<i64: 16, 1>}, {transform_indices = @transform_11, window_bounds = array<i64: 16, 32>}]} {
    %c0 = arith.constant 0 : index
    %c0_0 = arith.constant 0 : index
    %0 = vector.load %arg1[%c0, %c0_0] : memref<1x32xi32, #tpu.memory_space<vmem>>, vector<1x32xi32>
    %c0_1 = arith.constant 0 : index
    %c0_2 = arith.constant 0 : index
    %1 = vector.load %arg2[%c0_1, %c0_2] : memref<8x14xf32, #tpu.memory_space<vmem>>, vector<8x14xf32>
    %c0_3 = arith.constant 0 : index
    %c0_4 = arith.constant 0 : index
    %2 = vector.load %arg3[%c0_3, %c0_4] : memref<8x32xf32, #tpu.memory_space<vmem>>, vector<8x32xf32>
    %c1_i32 = arith.constant 1 : i32
    %3 = vector.broadcast %c1_i32 : i32 to vector<1x32xi32>
    %4 = arith.cmpi sge, %0, %3 : vector<1x32xi32>
    %c15_i32 = arith.constant 15 : i32
    %5 = vector.broadcast %c15_i32 : i32 to vector<1x32xi32>
    %6 = arith.cmpi slt, %0, %5 : vector<1x32xi32>
    %7 = arith.andi %4, %6 : vector<1x32xi1>
    %c1_i32_5 = arith.constant 1 : i32
    %8 = vector.broadcast %c1_i32_5 : i32 to vector<1x32xi32>
    %9 = arith.addi %0, %8 : vector<1x32xi32>
    %c1_i32_6 = arith.constant 1 : i32
    %10 = vector.broadcast %c1_i32_6 : i32 to vector<1x32xi32>
    %11 = arith.andi %9, %10 : vector<1x32xi32>
    %c0_i32 = arith.constant 0 : i32
    %12 = vector.broadcast %c0_i32 : i32 to vector<1x32xi32>
    %13 = arith.cmpi eq, %11, %12 : vector<1x32xi32>
    %c0_i32_7 = arith.constant 0 : i32
    %14 = vector.broadcast %c0_i32_7 : i32 to vector<1x32xi32>
    %15 = arith.cmpi sgt, %0, %14 : vector<1x32xi32>
    %c15_i32_8 = arith.constant 15 : i32
    %16 = vector.broadcast %c15_i32_8 : i32 to vector<1x32xi32>
    %17 = arith.cmpi slt, %0, %16 : vector<1x32xi32>
    %c0_9 = arith.constant 0 : index
    %c0_10 = arith.constant 0 : index
    %18 = vector.load %arg5[%c0_9, %c0_10] : memref<16x8xf32, #tpu.memory_space<vmem>>, vector<16x8xf32>
    %cst = arith.constant dense<0.000000e+00> : vector<16x14xf32>
    %19 = tpu.matmul %18, %1, %cst {dimension_numbers = #tpu.dot_dimension_numbers<[1], [0], [0], [1], [0, 0, 1, 1], [], []>} : vector<16x8xf32>, vector<8x14xf32>, vector<16x14xf32> -> vector<16x14xf32>
    %c0_11 = arith.constant 0 : index
    %c0_12 = arith.constant 0 : index
    %20 = vector.load %arg4[%c0_11, %c0_12] : memref<14x32xf32, #tpu.memory_space<vmem>>, vector<14x32xf32>
    %cst_13 = arith.constant dense<0.000000e+00> : vector<16x32xf32>
    %21 = tpu.matmul %19, %20, %cst_13 {dimension_numbers = #tpu.dot_dimension_numbers<[1], [0], [0], [1], [0, 0, 1, 1], [], []>} : vector<16x14xf32>, vector<14x32xf32>, vector<16x32xf32> -> vector<16x32xf32>
    %22 = vector.extract_strided_slice %21 {offsets = [0, 0], sizes = [8, 32], strides = [1, 1]} : vector<16x32xf32> to vector<8x32xf32>
    %23 = vector.extract_strided_slice %21 {offsets = [8, 0], sizes = [8, 32], strides = [1, 1]} : vector<16x32xf32> to vector<8x32xf32>
    %24 = vector.shape_cast %13 : vector<1x32xi1> to vector<1x32xi1>
    %25 = vector.broadcast %24 : vector<1x32xi1> to vector<8x32xi1>
    %26 = arith.select %25, %22, %23 : vector<8x32xi1>, vector<8x32xf32>
    %c0_14 = arith.constant 0 : index
    %c0_15 = arith.constant 0 : index
    %27 = vector.load %arg6[%c0_14, %c0_15] : memref<8x1xf32, #tpu.memory_space<vmem>>, vector<8x1xf32>
    %28 = vector.broadcast %27 : vector<8x1xf32> to vector<8x32xf32>
    %29 = arith.addf %26, %28 : vector<8x32xf32>
    %cst_16 = arith.constant 0.000000e+00 : f32
    %30 = vector.shape_cast %7 : vector<1x32xi1> to vector<1x32xi1>
    %31 = vector.broadcast %30 : vector<1x32xi1> to vector<8x32xi1>
    %32 = vector.broadcast %cst_16 : f32 to vector<8x32xf32>
    %33 = arith.select %31, %29, %32 : vector<8x32xi1>, vector<8x32xf32>
    %c1_i32_17 = arith.constant 1 : i32
    %34 = tpu.dynamic_rotate %2 by %c1_i32_17 dim 1 : vector<8x32xf32>, i32 -> vector<8x32xf32>
    %cst_18 = arith.constant 0.000000e+00 : f32
    %35 = vector.shape_cast %15 : vector<1x32xi1> to vector<1x32xi1>
    %36 = vector.broadcast %35 : vector<1x32xi1> to vector<8x32xi1>
    %37 = vector.broadcast %cst_18 : f32 to vector<8x32xf32>
    %38 = arith.select %36, %34, %37 : vector<8x32xi1>, vector<8x32xf32>
    %c31_i32 = arith.constant 31 : i32
    %39 = tpu.dynamic_rotate %2 by %c31_i32 dim 1 : vector<8x32xf32>, i32 -> vector<8x32xf32>
    %cst_19 = arith.constant 0.000000e+00 : f32
    %40 = vector.shape_cast %17 : vector<1x32xi1> to vector<1x32xi1>
    %41 = vector.broadcast %40 : vector<1x32xi1> to vector<8x32xi1>
    %42 = vector.broadcast %cst_19 : f32 to vector<8x32xf32>
    %43 = arith.select %41, %39, %42 : vector<8x32xi1>, vector<8x32xf32>
    %c1_i32_20 = arith.constant 1 : i32
    %44 = tpu.dynamic_rotate %33 by %c1_i32_20 dim 1 : vector<8x32xf32>, i32 -> vector<8x32xf32>
    %cst_21 = arith.constant 0.000000e+00 : f32
    %45 = vector.shape_cast %15 : vector<1x32xi1> to vector<1x32xi1>
    %46 = vector.broadcast %45 : vector<1x32xi1> to vector<8x32xi1>
    %47 = vector.broadcast %cst_21 : f32 to vector<8x32xf32>
    %48 = arith.select %46, %44, %47 : vector<8x32xi1>, vector<8x32xf32>
    %c31_i32_22 = arith.constant 31 : i32
    %49 = tpu.dynamic_rotate %33 by %c31_i32_22 dim 1 : vector<8x32xf32>, i32 -> vector<8x32xf32>
    %cst_23 = arith.constant 0.000000e+00 : f32
    %50 = vector.shape_cast %17 : vector<1x32xi1> to vector<1x32xi1>
    %51 = vector.broadcast %50 : vector<1x32xi1> to vector<8x32xi1>
    %52 = vector.broadcast %cst_23 : f32 to vector<8x32xf32>
    %53 = arith.select %51, %49, %52 : vector<8x32xi1>, vector<8x32xf32>
    %c0_24 = arith.constant 0 : index
    %c0_25 = arith.constant 0 : index
    %c0_26 = arith.constant 0 : index
    %54 = vector.load %arg7[%c0_24, %c0_25, %c0_26] : memref<3x16x8xf32, #tpu.memory_space<vmem>>, vector<1x16x8xf32>
    %55 = vector.shape_cast %54 : vector<1x16x8xf32> to vector<16x8xf32>
    %cst_27 = arith.constant dense<0.000000e+00> : vector<16x32xf32>
    %56 = tpu.matmul %55, %38, %cst_27 {dimension_numbers = #tpu.dot_dimension_numbers<[1], [0], [0], [1], [0, 0, 1, 1], [], []>} : vector<16x8xf32>, vector<8x32xf32>, vector<16x32xf32> -> vector<16x32xf32>
    %c0_28 = arith.constant 0 : index
    %c0_29 = arith.constant 0 : index
    %c0_30 = arith.constant 0 : index
    %57 = vector.load %arg8[%c0_28, %c0_29, %c0_30] : memref<3x16x8xf32, #tpu.memory_space<vmem>>, vector<1x16x8xf32>
    %58 = vector.shape_cast %57 : vector<1x16x8xf32> to vector<16x8xf32>
    %cst_31 = arith.constant dense<0.000000e+00> : vector<16x32xf32>
    %59 = tpu.matmul %58, %48, %cst_31 {dimension_numbers = #tpu.dot_dimension_numbers<[1], [0], [0], [1], [0, 0, 1, 1], [], []>} : vector<16x8xf32>, vector<8x32xf32>, vector<16x32xf32> -> vector<16x32xf32>
    %60 = arith.addf %56, %59 : vector<16x32xf32>
    %c1 = arith.constant 1 : index
    %c0_32 = arith.constant 0 : index
    %c0_33 = arith.constant 0 : index
    %61 = vector.load %arg7[%c1, %c0_32, %c0_33] : memref<3x16x8xf32, #tpu.memory_space<vmem>>, vector<1x16x8xf32>
    %62 = vector.shape_cast %61 : vector<1x16x8xf32> to vector<16x8xf32>
    %cst_34 = arith.constant dense<0.000000e+00> : vector<16x32xf32>
    %63 = tpu.matmul %62, %2, %cst_34 {dimension_numbers = #tpu.dot_dimension_numbers<[1], [0], [0], [1], [0, 0, 1, 1], [], []>} : vector<16x8xf32>, vector<8x32xf32>, vector<16x32xf32> -> vector<16x32xf32>
    %64 = arith.addf %60, %63 : vector<16x32xf32>
    %c1_35 = arith.constant 1 : index
    %c0_36 = arith.constant 0 : index
    %c0_37 = arith.constant 0 : index
    %65 = vector.load %arg8[%c1_35, %c0_36, %c0_37] : memref<3x16x8xf32, #tpu.memory_space<vmem>>, vector<1x16x8xf32>
    %66 = vector.shape_cast %65 : vector<1x16x8xf32> to vector<16x8xf32>
    %cst_38 = arith.constant dense<0.000000e+00> : vector<16x32xf32>
    %67 = tpu.matmul %66, %33, %cst_38 {dimension_numbers = #tpu.dot_dimension_numbers<[1], [0], [0], [1], [0, 0, 1, 1], [], []>} : vector<16x8xf32>, vector<8x32xf32>, vector<16x32xf32> -> vector<16x32xf32>
    %68 = arith.addf %64, %67 : vector<16x32xf32>
    %c2 = arith.constant 2 : index
    %c0_39 = arith.constant 0 : index
    %c0_40 = arith.constant 0 : index
    %69 = vector.load %arg7[%c2, %c0_39, %c0_40] : memref<3x16x8xf32, #tpu.memory_space<vmem>>, vector<1x16x8xf32>
    %70 = vector.shape_cast %69 : vector<1x16x8xf32> to vector<16x8xf32>
    %cst_41 = arith.constant dense<0.000000e+00> : vector<16x32xf32>
    %71 = tpu.matmul %70, %43, %cst_41 {dimension_numbers = #tpu.dot_dimension_numbers<[1], [0], [0], [1], [0, 0, 1, 1], [], []>} : vector<16x8xf32>, vector<8x32xf32>, vector<16x32xf32> -> vector<16x32xf32>
    %72 = arith.addf %68, %71 : vector<16x32xf32>
    %c2_42 = arith.constant 2 : index
    %c0_43 = arith.constant 0 : index
    %c0_44 = arith.constant 0 : index
    %73 = vector.load %arg8[%c2_42, %c0_43, %c0_44] : memref<3x16x8xf32, #tpu.memory_space<vmem>>, vector<1x16x8xf32>
    %74 = vector.shape_cast %73 : vector<1x16x8xf32> to vector<16x8xf32>
    %cst_45 = arith.constant dense<0.000000e+00> : vector<16x32xf32>
    %75 = tpu.matmul %74, %53, %cst_45 {dimension_numbers = #tpu.dot_dimension_numbers<[1], [0], [0], [1], [0, 0, 1, 1], [], []>} : vector<16x8xf32>, vector<8x32xf32>, vector<16x32xf32> -> vector<16x32xf32>
    %76 = arith.addf %72, %75 : vector<16x32xf32>
    %c0_46 = arith.constant 0 : index
    %c0_47 = arith.constant 0 : index
    %77 = vector.load %arg9[%c0_46, %c0_47] : memref<16x1xf32, #tpu.memory_space<vmem>>, vector<16x1xf32>
    %78 = vector.broadcast %77 : vector<16x1xf32> to vector<16x32xf32>
    %79 = arith.addf %76, %78 : vector<16x32xf32>
    %cst_48 = arith.constant 0.000000e+00 : f32
    %80 = vector.broadcast %cst_48 : f32 to vector<16x32xf32>
    %81 = arith.maximumf %79, %80 : vector<16x32xf32>
    %c1_i32_49 = arith.constant 1 : i32
    %82 = tpu.dynamic_rotate %81 by %c1_i32_49 dim 1 : vector<16x32xf32>, i32 -> vector<16x32xf32>
    %cst_50 = arith.constant 0.000000e+00 : f32
    %83 = vector.shape_cast %15 : vector<1x32xi1> to vector<1x32xi1>
    %84 = vector.broadcast %83 : vector<1x32xi1> to vector<16x32xi1>
    %85 = vector.broadcast %cst_50 : f32 to vector<16x32xf32>
    %86 = arith.select %84, %82, %85 : vector<16x32xi1>, vector<16x32xf32>
    %c31_i32_51 = arith.constant 31 : i32
    %87 = tpu.dynamic_rotate %81 by %c31_i32_51 dim 1 : vector<16x32xf32>, i32 -> vector<16x32xf32>
    %cst_52 = arith.constant 0.000000e+00 : f32
    %88 = vector.shape_cast %17 : vector<1x32xi1> to vector<1x32xi1>
    %89 = vector.broadcast %88 : vector<1x32xi1> to vector<16x32xi1>
    %90 = vector.broadcast %cst_52 : f32 to vector<16x32xf32>
    %91 = arith.select %89, %87, %90 : vector<16x32xi1>, vector<16x32xf32>
    %c0_53 = arith.constant 0 : index
    %c0_54 = arith.constant 0 : index
    %c0_55 = arith.constant 0 : index
    %92 = vector.load %arg10[%c0_53, %c0_54, %c0_55] : memref<3x16x16xf32, #tpu.memory_space<vmem>>, vector<1x16x16xf32>
    %93 = vector.shape_cast %92 : vector<1x16x16xf32> to vector<16x16xf32>
    %cst_56 = arith.constant dense<0.000000e+00> : vector<16x32xf32>
    %94 = tpu.matmul %93, %86, %cst_56 {dimension_numbers = #tpu.dot_dimension_numbers<[1], [0], [0], [1], [0, 0, 1, 1], [], []>} : vector<16x16xf32>, vector<16x32xf32>, vector<16x32xf32> -> vector<16x32xf32>
    %c1_57 = arith.constant 1 : index
    %c0_58 = arith.constant 0 : index
    %c0_59 = arith.constant 0 : index
    %95 = vector.load %arg10[%c1_57, %c0_58, %c0_59] : memref<3x16x16xf32, #tpu.memory_space<vmem>>, vector<1x16x16xf32>
    %96 = vector.shape_cast %95 : vector<1x16x16xf32> to vector<16x16xf32>
    %cst_60 = arith.constant dense<0.000000e+00> : vector<16x32xf32>
    %97 = tpu.matmul %96, %81, %cst_60 {dimension_numbers = #tpu.dot_dimension_numbers<[1], [0], [0], [1], [0, 0, 1, 1], [], []>} : vector<16x16xf32>, vector<16x32xf32>, vector<16x32xf32> -> vector<16x32xf32>
    %98 = arith.addf %94, %97 : vector<16x32xf32>
    %c2_61 = arith.constant 2 : index
    %c0_62 = arith.constant 0 : index
    %c0_63 = arith.constant 0 : index
    %99 = vector.load %arg10[%c2_61, %c0_62, %c0_63] : memref<3x16x16xf32, #tpu.memory_space<vmem>>, vector<1x16x16xf32>
    %100 = vector.shape_cast %99 : vector<1x16x16xf32> to vector<16x16xf32>
    %cst_64 = arith.constant dense<0.000000e+00> : vector<16x32xf32>
    %101 = tpu.matmul %100, %91, %cst_64 {dimension_numbers = #tpu.dot_dimension_numbers<[1], [0], [0], [1], [0, 0, 1, 1], [], []>} : vector<16x16xf32>, vector<16x32xf32>, vector<16x32xf32> -> vector<16x32xf32>
    %102 = arith.addf %98, %101 : vector<16x32xf32>
    %c0_65 = arith.constant 0 : index
    %c0_66 = arith.constant 0 : index
    %103 = vector.load %arg11[%c0_65, %c0_66] : memref<16x1xf32, #tpu.memory_space<vmem>>, vector<16x1xf32>
    %104 = vector.broadcast %103 : vector<16x1xf32> to vector<16x32xf32>
    %105 = arith.addf %102, %104 : vector<16x32xf32>
    %cst_67 = arith.constant 0.000000e+00 : f32
    %106 = vector.broadcast %cst_67 : f32 to vector<16x32xf32>
    %107 = arith.maximumf %105, %106 : vector<16x32xf32>
    %c0_68 = arith.constant 0 : index
    %c0_69 = arith.constant 0 : index
    %108 = vector.load %arg12[%c0_68, %c0_69] : memref<16x32xf32, #tpu.memory_space<vmem>>, vector<16x32xf32>
    tpu.vector_store %arg12[%c0_68, %c0_69], %107 {strides = array<i32>} : memref<16x32xf32, #tpu.memory_space<vmem>>, vector<16x32xf32>,
    return
  }
  func.func @transform_0(%arg0: i32) -> (i32, i32) {
    %c0_i32 = arith.constant 0 : i32
    %c0_i32_0 = arith.constant 0 : i32
    %c0_i32_1 = arith.constant 0 : i32
    return %c0_i32, %c0_i32_0 : i32, i32
  }
  func.func @transform_1(%arg0: i32) -> (i32, i32) {
    %c0_i32 = arith.constant 0 : i32
    %c0_i32_0 = arith.constant 0 : i32
    return %c0_i32, %arg0 : i32, i32
  }
  func.func @transform_2(%arg0: i32) -> (i32, i32) {
    %c0_i32 = arith.constant 0 : i32
    %c0_i32_0 = arith.constant 0 : i32
    return %c0_i32, %arg0 : i32, i32
  }
  func.func @transform_3(%arg0: i32) -> (i32, i32) {
    %c0_i32 = arith.constant 0 : i32
    %c0_i32_0 = arith.constant 0 : i32
    %c0_i32_1 = arith.constant 0 : i32
    return %c0_i32, %c0_i32_0 : i32, i32
  }
  func.func @transform_4(%arg0: i32) -> (i32, i32) {
    %c0_i32 = arith.constant 0 : i32
    %c0_i32_0 = arith.constant 0 : i32
    %c0_i32_1 = arith.constant 0 : i32
    return %c0_i32, %c0_i32_0 : i32, i32
  }
  func.func @transform_5(%arg0: i32) -> (i32, i32) {
    %c0_i32 = arith.constant 0 : i32
    %c0_i32_0 = arith.constant 0 : i32
    %c0_i32_1 = arith.constant 0 : i32
    return %c0_i32, %c0_i32_0 : i32, i32
  }
  func.func @transform_6(%arg0: i32) -> (i32, i32, i32) {
    %c0_i32 = arith.constant 0 : i32
    %c0_i32_0 = arith.constant 0 : i32
    %c0_i32_1 = arith.constant 0 : i32
    %c0_i32_2 = arith.constant 0 : i32
    return %c0_i32, %c0_i32_0, %c0_i32_1 : i32, i32, i32
  }
  func.func @transform_7(%arg0: i32) -> (i32, i32, i32) {
    %c0_i32 = arith.constant 0 : i32
    %c0_i32_0 = arith.constant 0 : i32
    %c0_i32_1 = arith.constant 0 : i32
    %c0_i32_2 = arith.constant 0 : i32
    return %c0_i32, %c0_i32_0, %c0_i32_1 : i32, i32, i32
  }
  func.func @transform_8(%arg0: i32) -> (i32, i32) {
    %c0_i32 = arith.constant 0 : i32
    %c0_i32_0 = arith.constant 0 : i32
    %c0_i32_1 = arith.constant 0 : i32
    return %c0_i32, %c0_i32_0 : i32, i32
  }
  func.func @transform_9(%arg0: i32) -> (i32, i32, i32) {
    %c0_i32 = arith.constant 0 : i32
    %c0_i32_0 = arith.constant 0 : i32
    %c0_i32_1 = arith.constant 0 : i32
    %c0_i32_2 = arith.constant 0 : i32
    return %c0_i32, %c0_i32_0, %c0_i32_1 : i32, i32, i32
  }
  func.func @transform_10(%arg0: i32) -> (i32, i32) {
    %c0_i32 = arith.constant 0 : i32
    %c0_i32_0 = arith.constant 0 : i32
    %c0_i32_1 = arith.constant 0 : i32
    return %c0_i32, %c0_i32_0 : i32, i32
  }
  func.func @transform_11(%arg0: i32) -> (i32, i32) {
    %c0_i32 = arith.constant 0 : i32
    %c0_i32_0 = arith.constant 0 : i32
    return %c0_i32, %arg0 : i32, i32
  }
}

</mosaic_0001>

<bundles_post_ra>
// kernel: tile.9
= control target key start
LH: loop header
LB: loop body
LE: loop exit
PB: predicated region body
PF: predicated region fallthrough
CT: control target
= control target key end

     0   :  { %vm7_vm0 = vcmask 130048   ;;  %vm13_vm1 = vcmask 261248   ;;  %s39_s0 = inlined_call_operand.vmem [shape: s32[2,16], index: 0, kind: input, shape index: {}]   ;;  %s40_s1 = inlined_call_operand.vmem [shape: s32[1,32], index: 1, kind: output, shape index: {}]  }
   0x1   :  { %v4_v0 = vld [vmem:[%s39_s0] sm:$0x3]  ;;  %s22_s0 = smov 16  }
   0x2   :  { %5 = vst [vmem:[#allocation1] sm:$0x3] %v4_v0 }
   0x9   :  { %v10_v1 = vld [vmem:[#allocation1 + $0x1] sm:$0x1]   ;;  %v6_v2 = vld [vmem:[#allocation1] sm:$0x1]  }
   0xa   :  { %11 = vrot.lane.b32.xlu0 %v10_v1, %s22_s0  ;;  %8 = vst.msk [vmem:[#allocation0] sm:$0x1] %vm7_vm0, %v6_v2  }
  0x7c   :  { %v12_v3 = vpop.permute.xlu0 %11  }
  0x7d   :  { %14 = vst.msk [vmem:[#allocation0] sm:$0x1] %vm13_vm1, %v12_v3  }
  0x84   :  { %v18_v4 = vld [vmem:[#allocation0] sm:$0x1] }
  0x85   :  { %20 = vst [vmem:[%s40_s1] sm:$0x1] %v18_v4 }

// kernel: upscale_forward.1
= control target key start
LH: loop header
LB: loop body
LE: loop exit
PB: predicated region body
PF: predicated region fallthrough
CT: control target
= control target key end

     0   :  { %16 = vsyncpa [#allocation3], 0  ;;  %s1735_s0 = inlined_call_operand.vmem [shape: s32[1,32], index: 0, kind: input, shape index: {}]   ;;  %s1736_s1 = inlined_call_operand.vmem [shape: f32[8,14], index: 1, kind: input, shape index: {}]   ;;  %s1737_s2 = inlined_call_operand.vmem [shape: f32[8,32], index: 2, kind: input, shape index: {}]   ;;  %s1738_s3 = inlined_call_operand.vmem [shape: f32[14,32], index: 3, kind: input, shape index: {}]   ;;  %s1739_s4 = inlined_call_operand.vmem [shape: f32[16,8], index: 4, kind: input, shape index: {}]   ;;  %s1740_s5 = inlined_call_operand.vmem [shape: f32[8,1], index: 5, kind: input, shape index: {}]   ;;  %s1741_s6 = inlined_call_operand.vmem [shape: f32[3,16,8], index: 6, kind: input, shape index: {}]   ;;  %s1742_s7 = inlined_call_operand.vmem [shape: f32[3,16,8], index: 7, kind: input, shape index: {}]   ;;  %s1743_s8 = inlined_call_operand.hbm [shape: f32[16,1], index: 8, kind: input, shape index: {}]   ;;  %s1744_s9 = inlined_call_operand.hbm [shape: f32[3,16,16], index: 9, kind: input, shape index: {}]   ;;  %s1745_s10 = inlined_call_operand.hbm [shape: f32[16,1], index: 10, kind: input, shape index: {}]   ;;  %s1746_s11 = inlined_call_operand.vmem [shape: f32[16,32], index: 11, kind: output, shape index: {}]  }
   0x1   :  { %17 = vsyncpa [#allocation5], 0  ;;  %s1438_s17 = smov [#allocation4]   ;;  %s1439_s19 = smov [#allocation2]  }
   0x2   :  { %s51_s18 = sshll.u32 %s1438_s17, 4  ;;  %s39_s20 = sshll.u32 %s1439_s19, 4  ;;  %s52_s18 = int_to_ptr.vmem [resolvable:$true] %s51_s18  ;;  %s1508_s20 = int_to_ptr.vmem [resolvable:$true] %s39_s20 }
   0x3   :  { %s1368_s23 = scalar_lea.hbm %s1744_s9, 768 }
   0x4   :  { %p1369_p0 = scmp.ne.s32.totalorder %s1744_s9, %s1368_s23  ;;  %p1372_p1 = scmp.lt.u32.totalorder %s1368_s23, %s1744_s9 }
   0x6   :  { %p1374_p2 = pnand %p1372_p1, %p1369_p0 }
   0x8   :  { %1377 = shalt.err (!%p1374_p2)
}
   0x9   :  { %s1378_s28 = scalar_lea.vmem %s52_s18, 768  ;;  %p1383_p4 = scmp.lt.s32.totalorder %s52_s18, %s52_s18 }
   0xa   :  { %p1379_p3 = scmp.ne.s32.totalorder %s52_s18, %s1378_s28  ;;  %p1384_p5 = scmp.lt.s32.totalorder %s1378_s28, %s1378_s28 }
   0xc   :  { %p1385_p6 = por %p1384_p5, %p1383_p4 }
   0xe   :  { %p1386_p7 = pnand %p1385_p6, %p1379_p3 }
  0x10   :  { %1389 = shalt.err (!%p1386_p7)
}
  0x11   :  { %s1440_s29 = smov 128   ;;  %s1441_s30 = smov 8  }
  0x12   :  { %57 = dma.hbm_to_vmem [thread:$0]  %s1744_s9, 768, %s52_s18, [#allocation5], %s1440_s29, %s1440_s29, %s1441_s30  }
  0x13   :  { %s1390_s16 = scalar_lea.hbm %s1743_s8, 256 }
  0x14   :  { %p1391_p8 = scmp.ne.s32.totalorder %s1743_s8, %s1390_s16  ;;  %p1394_p9 = scmp.lt.u32.totalorder %s1390_s16, %s1743_s8 }
  0x16   :  { %p1396_p10 = pnand %p1394_p9, %p1391_p8 }
  0x18   :  { %1399 = shalt.err (!%p1396_p10)
}
  0x19   :  { %s1400_s23 = scalar_lea.vmem %s1508_s20, 256  ;;  %p1405_p12 = scmp.lt.s32.totalorder %s1508_s20, %s1508_s20 }
  0x1a   :  { %p1401_p11 = scmp.ne.s32.totalorder %s1508_s20, %s1400_s23  ;;  %p1406_p13 = scmp.lt.s32.totalorder %s1400_s23, %s1400_s23 }
  0x1c   :  { %p1407_p0 = por %p1406_p13, %p1405_p12 }
  0x1e   :  { %p1408_p1 = pnand %p1407_p0, %p1401_p11 }
  0x20   :  { %1411 = shalt.err (!%p1408_p1)
}
  0x21   :  { %45 = dma.hbm_to_vmem [thread:$0]  %s1743_s8, 256, %s1508_s20, [#allocation3], %s1440_s29, %s1440_s29, %s1441_s30  }
  0x22   :  { %s1442_s24 = smov [#allocation6]   ;;  %s1412_s28 = scalar_lea.hbm %s1745_s10, 256 }
  0x23   :  { %s63_s25 = sshll.u32 %s1442_s24, 4  ;;  %p1413_p2 = scmp.ne.s32.totalorder %s1745_s10, %s1412_s28  ;;  %s64_s25 = int_to_ptr.vmem [resolvable:$true] %s63_s25 }
  0x24   :  { %p1416_p3 = scmp.lt.u32.totalorder %s1412_s28, %s1745_s10 }
  0x26   :  { %p1418_p4 = pnand %p1416_p3, %p1413_p2 }
  0x28   :  { %1421 = shalt.err (!%p1418_p4)
}
  0x29   :  { %s1422_s16 = scalar_lea.vmem %s64_s25, 256  ;;  %p1427_p6 = scmp.lt.s32.totalorder %s64_s25, %s64_s25 }
  0x2a   :  { %p1423_p5 = scmp.ne.s32.totalorder %s64_s25, %s1422_s16  ;;  %p1428_p7 = scmp.lt.s32.totalorder %s1422_s16, %s1422_s16 }
  0x2c   :  { %p1429_p8 = por %p1428_p7, %p1427_p6 }
  0x2e   :  { %p1430_p9 = pnand %p1429_p8, %p1423_p5 }
  0x30   :  { %1433 = shalt.err (!%p1430_p9)
}
  0x31   :  { %69 = dma.hbm_to_vmem [thread:$0]  %s1745_s10, 256, %s64_s25, [#allocation5], %s1440_s29, %s1440_s29, %s1441_s30  }
  0x32   :  { %1434 = dma.done.wait [#allocation3], 256  }
  0x33   :  { %1435 = vsyncadd [#allocation3], 4294967040 }
  0x34   :  { %1436 = dma.done.wait [#allocation5], 1024  }
  0x35   :  { %1437 = vsyncadd [#allocation5], 4294966272  ;;  %vm91_vm0 = vcmask 64512   ;;  %vm182_vm1 = vcmask 1045504   ;;  %v80_v0 = vld [vmem:[%s1736_s1] sm:$0xff]  ;;  %v90_v2 = vld [vmem:[%s1739_s4 + $0x8] sm:$0xff]  ;;  %v262_v13 = vlaneseq }
  0x36   :  { %v89_v1 = vld [vmem:[%s1739_s4] sm:$0xff]  ;;  %1237 = vmatprep.subr.mxu1 %v80_v0  ;;  %v174_v4 = vld [vmem:[%s1738_s3 + $0x8] sm:$0x3f]  ;;  %vm1443_vm2 = vmmov 1   ;;  %v1444_v7 = vmov 0   ;;  %vm175_vm4 = vcmask 113664  }
  0x37   :  { %1239 = vmatprep.mubr.msk.f32.mxu1 %vm91_vm0, %v89_v1  ;;  %v173_v3 = vld [vmem:[%s1738_s3] sm:$0xff]  ;;  %vm1301_vm3 = vmpackc.low %vm182_vm1, %vm1443_vm2  ;;  %1238 = vmatpush3.msra.mxu1 %v80_v0  ;;  %s1445_s25 = smov 32   ;;  %v263_v15 = vshrl.u32 %v262_v13, 7  ;;  %vm282_vm11 = vcmask 1047808   ;;  %s1447_s28 = smov 127   ;;  %v836_v37 = vld [vmem:[#allocation2 + $0x8] sm:$0xff] }
  0x38   :  { %v1300_v5 = vpack.c.bf16 %v174_v4, %v173_v3  ;;  %1240 = vmatmul.mubr.msk.f32.vlgmr.msra.gmra.mrb[0].mxu1 %vm91_vm0, %v90_v2  ;;  %v268_v6 = vld [vmem:[%s1740_s5] sm:$0xff]  ;;  %1346 = vset.pattern.permute.xlu0 %v1444_v7  ;;  %v328_v43 = vld [vmem:[%s1742_s7 + $0x8] sm:$0xff]  ;;  %v1171_v47 = vld [vmem:[%s1741_s6 + $0x10] sm:$0xff]  ;;  %vm886_vm15 = vcmask 130048   ;;  %vm1151_vm2 = vcmask 261120  }
  0x39   :  { %1347 = vset.pattern.permute.xlu1 %v1444_v7  ;;  %271 = vperm.xlu0 %1346, %v268_v6   ;;  %v1585_v10 = vld [vmem:[%s1737_s2] sm:$0xff]  ;;  %v1597_v16 = vsub.s32 0, %v263_v15  ;;  %v326_v46 = vld [vmem:[%s1741_s6 + $0x8] sm:$0xff]  ;;  %v1172_v50 = vld [vmem:[%s1741_s6 + $0x18] sm:$0xff] }
  0x3a   :  { %1302 = vmatprep.subr.msk.bf16.mxu1 %vm1301_vm3, %v1300_v5  ;;  %283 = vrot.lane.b32.xlu1 %v1585_v10, %s1445_s25  ;;  %v1592_v11 = vld [vmem:[%s1735_s0] sm:$0x1]  ;;  %s1446_s0 = smov 97   ;;  %v1175_v51 = vld [vmem:[%s1742_s7 + $0x10] sm:$0xff]  ;;  %v1176_v54 = vld [vmem:[%s1742_s7 + $0x18] sm:$0xff] }
  0x3b   :  { %1305 = vmatpush3.bf16.msk.msra.mxu1 %vm1301_vm3, %v1300_v5  ;;  %v85_v12 = vadd.s32 1, %v1592_v11  ;;  %vm82_vm6 = vcmp.ge.s32.totalorder %v1592_v11, 1  ;;  %vm83_vm7 = vcmp.lt.s32.totalorder %v1592_v11, 15  ;;  %v327_v34 = vld [vmem:[%s1742_s7] sm:$0xff]  ;;  %vm88_vm12 = vcmp.gt.s32.totalorder %v1592_v11, 0  ;;  %v1181_v57 = vld [vmem:[%s1741_s6 + $0x28] sm:$0xff] }
  0x3c   :  { %vm84_vm8 = vmand %vm82_vm6, %vm83_vm7  ;;  %1251 = vmatprep.mubr.msk.f32.mxu0 %vm91_vm0, %v327_v34  ;;  %v835_v38 = vld [vmem:[#allocation2] sm:$0xff]  ;;  %v289_v39 = vsel %vm88_vm12, 1, %v1444_v7  ;;  %v300_v48 = vsel %vm83_vm7, 1, %v1444_v7  ;;  %v1186_v59 = vld [vmem:[%s1742_s7 + $0x28] sm:$0xff] }
  0x3d   :  { %v86_v14 = vand.u32 1, %v85_v12  ;;  %v275_v19 = vsel %vm84_vm8, 1, %v1444_v7  ;;  %v293_v40 = vrot.slane %v289_v39, %v1597_v16  ;;  %v325_v44 = vld [vmem:[%s1741_s6] sm:$0xff]  ;;  %v304_v49 = vrot.slane %v300_v48, %v1597_v16  ;;  %v885_v13 = vld [vmem:[#allocation4 + $0x18] sm:$0xff] }
  0x3e   :  { %v279_v20 = vrot.slane %v275_v19, %v1597_v16  ;;  %v1180_v55 = vld [vmem:[%s1741_s6 + $0x20] sm:$0xff] }
  0x3f   :  { %vm87_vm5 = vcmp.eq.s32.totalorder %v86_v14, 0  ;;  %vm1631_vm13 = vcmp.eq.s32.totalorder %v293_v40, 1  ;;  %vm1673_vm14 = vcmp.eq.s32.totalorder %v304_v49, 1  ;;  %v1185_v58 = vld [vmem:[%s1742_s7 + $0x20] sm:$0xff]  ;;  %v881_v14 = vld [vmem:[#allocation4] sm:$0xff] }
  0x40   :  { %v261_v17 = vsel %vm87_vm5, 1, %v1444_v7  ;;  %vm1605_vm10 = vcmp.eq.s32.totalorder %v279_v20, 1  ;;  %vm1317_vm1 = vmpackc.low %vm1673_vm14, %vm1673_vm14 }
  0x41   :  { %v265_v18 = vrot.slane %v261_v17, %v1597_v16 }
  0x43   :  { %vm266_vm9 = vcmp.eq.s32.totalorder %v265_v18, 1 }
  0xac   :  { %v284_v27 = vpop.permute.xlu1 %283 }
  0xad   :  { %v285_v29 = vsel %vm282_vm11, %v284_v27, %v1585_v10 }
  0xb8   :  { %v272_v22 = vpop.permute.xlu0 %271 }
 0x10b   :  { %v1241_v8 = vpop.f32.mrb[0].mxu1 }
 0x10c   :  { %v164_v9 = vpop.f32.mrb[1].mxu1 }
 0x10d   :  { %1246 = vmatprep.mubr.msk.f32.mxu1 %vm175_vm4, %v164_v9  ;;  %v884_v9 = vld [vmem:[#allocation4 + $0x10] sm:$0xff] }
 0x10e   :  { %1247 = vmatmul.mubr.msk.f32.vlgmr.msra.gmra.mrb[2].mxu1 %vm175_vm4, %v1241_v8 }
 0x10f   :  { %1283 = vmatprep.mubr.msk.f32.mxu1 %vm886_vm15, %v884_v9 }
 0x1e1   :  { %v1248_v21 = vpop.f32.mrb[2].mxu1 }
 0x1e2   :  { %v252_v23 = vpop.f32.mrb[3].mxu1 }
 0x1e3   :  { %v267_v24 = vsel %vm266_vm9, %v252_v23, %v1248_v21  ;;  %v1136_v21 = vld [vmem:[#allocation6 + $0x8] sm:$0xff] }
 0x1e4   :  { %v274_v26 = vadd.f32 %v272_v22, %v267_v24  ;;  %v1135_v22 = vld [vmem:[#allocation6] sm:$0xff] }
 0x1e6   :  { %v281_v28 = vsel %vm1605_vm10, %v274_v26, 0.0 }
 0x1e7   :  { %310 = vrot.lane.b32.xlu0 %v281_v28, %s1445_s25 }
 0x1eb   :  { %286 = vrot.lane.b32.xlu0 %v285_v29, %s1445_s25 }
 0x259   :  { %v311_v30 = vpop.permute.xlu0 %310 }
 0x25a   :  { %v312_v31 = vsel %vm282_vm11, %v311_v30, %v281_v28 }
 0x25b   :  { %313 = vrot.lane.b32.xlu1 %v312_v31, %s1445_s25  ;;  %v882_v31 = vld [vmem:[#allocation4 + $0x8] sm:$0xff] }
 0x25d   :  { %v287_v32 = vpop.permute.xlu0 %286 }
 0x25e   :  { %v288_v33 = vsel %vm282_vm11, %v287_v32, %v1585_v10  ;;  %v1050_v32 = vld [vmem:[#allocation4 + $0x20] sm:$0xff] }
 0x25f   :  { %296 = vrot.lane.b32.xlu0 %v288_v33, %s1446_s0 }
 0x2cd   :  { %v314_v35 = vpop.permute.xlu1 %313 }
 0x2ce   :  { %v315_v36 = vsel %vm282_vm11, %v314_v35, %v281_v28 }
 0x2cf   :  { %317 = vrot.lane.b32.xlu1 %v315_v36, %s1446_s0  ;;  %321 = vrot.lane.b32.xlu0 %v315_v36, %s1447_s28 }
 0x2d1   :  { %v297_v45 = vpop.permute.xlu0 %296 }
 0x2d3   :  { %844 = vperm.xlu0 %1346, %v836_v37   ;;  %306 = vrot.lane.b32.xlu1 %v288_v33, %s1447_s28  ;;  %v1051_v33 = vld [vmem:[#allocation4 + $0x28] sm:$0xff] }
 0x2d7   :  { %839 = vperm.xlu1 %1347, %v835_v38  }
 0x341   :  { %v318_v42 = vpop.permute.xlu1 %317  ;;  %v322_v56 = vpop.permute.xlu0 %321 }
 0x342   :  { %1249 = vmatprep.subr.msk.mxu0 %vm1631_vm13, %v318_v42 }
 0x343   :  { %1250 = vmatpush3.msk.msra.mxu0 %vm1631_vm13, %v318_v42 }
 0x344   :  { %1252 = vmatmul.mubr.msk.f32.vlgmr.msra.gmra.mrb[0].mxu0 %vm91_vm0, %v328_v43  ;;  %1254 = vmatprep.subr.msk.mxu0 %vm1631_vm13, %v297_v45 }
 0x345   :  { %1255 = vmatpush3.msk.msra.mxu0 %vm1631_vm13, %v297_v45  ;;  %1256 = vmatprep.mubr.msk.f32.mxu0 %vm91_vm0, %v325_v44  ;;  %v307_v53 = vpop.permute.xlu1 %306 }
 0x346   :  { %1259 = vmatprep.subr.mxu0 %v1585_v10 }
 0x34c   :  { %1257 = vmatmul.mubr.msk.f32.vlgmr.msra.gmra.mrb[0].mxu0 %vm91_vm0, %v326_v46 }
 0x34d   :  { %1260 = vmatpush3.msra.mxu0 %v1585_v10  ;;  %1261 = vmatprep.mubr.msk.f32.mxu0 %vm91_vm0, %v1171_v47 }
 0x34e   :  { %1264 = vmatprep.subr.msk.mxu0 %vm1605_vm10, %v274_v26 }
 0x352   :  { %v845_v61 = vpop.permute.xlu0 %844 }
 0x354   :  { %1262 = vmatmul.mubr.msk.f32.vlgmr.msra.gmra.mrb[0].mxu0 %vm91_vm0, %v1172_v50 }
 0x355   :  { %1265 = vmatpush3.msk.msra.mxu0 %vm1605_vm10, %v274_v26  ;;  %1266 = vmatprep.mubr.msk.f32.mxu0 %vm91_vm0, %v1175_v51 }
 0x356   :  { %1269 = vmatprep.subr.msk.mxu0 %vm1673_vm14, %v307_v53  ;;  %v840_v60 = vpop.permute.xlu1 %839 }
 0x35c   :  { %1267 = vmatmul.mubr.msk.f32.vlgmr.msra.gmra.mrb[0].mxu0 %vm91_vm0, %v1176_v54 }
 0x35d   :  { %1270 = vmatpush3.msk.msra.mxu0 %vm1673_vm14, %v307_v53  ;;  %1271 = vmatprep.mubr.msk.f32.mxu0 %vm91_vm0, %v1180_v55 }
 0x35e   :  { %1274 = vmatprep.subr.msk.mxu0 %vm1673_vm14, %v322_v56 }
 0x364   :  { %1272 = vmatmul.mubr.msk.f32.vlgmr.msra.gmra.mrb[0].mxu0 %vm91_vm0, %v1181_v57 }
 0x365   :  { %1275 = vmatpush3.msk.msra.mxu0 %vm1673_vm14, %v322_v56  ;;  %1276 = vmatprep.mubr.msk.f32.mxu0 %vm91_vm0, %v1185_v58 }
 0x36c   :  { %1277 = vmatmul.mubr.msk.f32.vlgmr.msra.gmra.mrb[0].mxu0 %vm91_vm0, %v1186_v59  ;;  %vm1311_vm0 = vmpackc.low %vm1631_vm13, %vm1631_vm13 }
 0x43f   :  { %v1278_v62 = vpop.f32.mrb[0].mxu0 }
 0x440   :  { %v848_v63 = vadd.f32 %v1278_v62, %v845_v61  ;;  %v824_v0 = vpop.f32.mrb[1].mxu0 }
 0x441   :  { %v847_v1 = vadd.f32 %v840_v60, %v824_v0 }
 0x442   :  { %v850_v2 = vmax.f32 %v848_v63, 0.0 }
 0x443   :  { %v849_v3 = vmax.f32 %v847_v1, 0.0 }
 0x445   :  { %v1348_v4 = vpack.i.bf16 %v850_v2, %v849_v3  ;;  %v1306_v5 = vpack.c.bf16 %v850_v2, %v849_v3 }
 0x447   :  { %1349 = vrot.lane.b32.xlu1 %v1348_v4, %s1445_s25  ;;  %1307 = vmatprep.subr.bf16.mxu1 %v1306_v5 }
 0x448   :  { %1309 = vmatpush3.bf16.msra.mxu1 %v1306_v5 }
 0x44b   :  { %1284 = vmatmul.mubr.msk.f32.vlgmr.msra.gmra.mrb[4].mxu1 %vm886_vm15, %v885_v13 }
 0x44c   :  { %1290 = vmatprep.mubr.msk.f32.mxu1 %vm886_vm15, %v881_v14 }
 0x4b9   :  { %v1350_v6 = vpop.permute.xlu1 %1349 }
 0x4ba   :  { %v1352_v7 = vunpack.i.h.bf16 %v1350_v6  ;;  %v1351_v8 = vunpack.i.l.bf16 %v1350_v6 }
 0x4bc   :  { %v853_v10 = vsel %vm282_vm11, %v1351_v8, %v849_v3  ;;  %v856_v11 = vsel %vm282_vm11, %v1352_v7, %v850_v2 }
 0x4bd   :  { %v1353_v12 = vpack.i.bf16 %v856_v11, %v853_v10 }
 0x4bf   :  { %1354 = vrot.lane.b32.xlu0 %v1353_v12, %s1445_s25 }
 0x531   :  { %v1355_v15 = vpop.permute.xlu0 %1354 }
 0x532   :  { %v1357_v16 = vunpack.i.h.bf16 %v1355_v15  ;;  %v1356_v17 = vunpack.i.l.bf16 %v1355_v15 }
 0x534   :  { %v861_v18 = vsel %vm282_vm11, %v1356_v17, %v849_v3  ;;  %v862_v19 = vsel %vm282_vm11, %v1357_v16, %v850_v2 }
 0x535   :  { %v1363_v20 = vpack.i.bf16 %v862_v19, %v861_v18 }
 0x537   :  { %1364 = vrot.lane.b32.xlu0 %v1363_v20, %s1447_s28  ;;  %1359 = vrot.lane.b32.xlu1 %v1363_v20, %s1446_s0 }
 0x53b   :  { %1144 = vperm.xlu0 %1346, %v1136_v21   ;;  %1139 = vperm.xlu1 %1347, %v1135_v22  }
 0x5a9   :  { %v1365_v23 = vpop.permute.xlu0 %1364  ;;  %v1360_v24 = vpop.permute.xlu1 %1359 }
 0x5aa   :  { %v1367_v25 = vunpack.i.h.bf16 %v1365_v23  ;;  %v1366_v26 = vunpack.i.l.bf16 %v1365_v23  ;;  %v1362_v27 = vunpack.i.h.bf16 %v1360_v24  ;;  %v1361_v28 = vunpack.i.l.bf16 %v1360_v24 }
 0x5ac   :  { %v1310_v29 = vpack.c.bf16 %v1362_v27, %v1361_v28  ;;  %v1316_v30 = vpack.c.bf16 %v1367_v25, %v1366_v26 }
 0x5ae   :  { %1312 = vmatprep.subr.msk.bf16.mxu1 %vm1311_vm0, %v1310_v29 }
 0x5af   :  { %1315 = vmatpush3.bf16.msk.msra.mxu1 %vm1311_vm0, %v1310_v29 }
 0x5b0   :  { %1318 = vmatprep.subr.msk.bf16.mxu1 %vm1317_vm1, %v1316_v30 }
 0x5b2   :  { %1291 = vmatmul.mubr.msk.f32.vlgmr.msra.gmra.mrb[4].mxu1 %vm886_vm15, %v882_v31 }
 0x5b3   :  { %1321 = vmatpush3.bf16.msk.msra.mxu1 %vm1317_vm1, %v1316_v30  ;;  %1297 = vmatprep.mubr.msk.f32.mxu1 %vm886_vm15, %v1050_v32 }
 0x5ba   :  { %1298 = vmatmul.mubr.msk.f32.vlgmr.msra.gmra.mrb[4].mxu1 %vm886_vm15, %v1051_v33  ;;  %v1145_v34 = vpop.permute.xlu0 %1144  ;;  %v1140_v36 = vpop.permute.xlu1 %1139 }
 0x68d   :  { %v1299_v35 = vpop.f32.mrb[4].mxu1 }
 0x68e   :  { %v1148_v37 = vadd.f32 %v1299_v35, %v1145_v34  ;;  %v1124_v38 = vpop.f32.mrb[5].mxu1 }
 0x68f   :  { %v1147_v39 = vadd.f32 %v1140_v36, %v1124_v38 }
 0x690   :  { %v1150_v40 = vmax.f32 %v1148_v37, 0.0 }
 0x691   :  { %v1149_v41 = vmax.f32 %v1147_v39, 0.0 }
 0x692   :  { %1153 = vst.msk [vmem:[%s1746_s11 + $0x8] sm:$0xff] %vm1151_vm2, %v1150_v40 }
 0x693   :  { %1152 = vst.msk [vmem:[%s1746_s11] sm:$0xff] %vm1151_vm2, %v1149_v41 }
 0x694   :  { %1158 = vsyncpa [#allocation3], 1 }
 0x695   :  { %1159 = vsyncpa [#allocation5], 1 }

</bundles_post_ra>
